<compile_context>
chip_gen: v7x
topology: tpu7x:2x2x1
jax: 0.10.0
libtpu: 0.0.40
codegen_flags: <defaults>
</compile_context>

<pallas_src>
import functools

import jax
import jax.numpy as jnp
from jax import lax
from jax.experimental import pallas as pl
from jax.experimental.pallas import tpu as pltpu


# ---------------------------------------------------------------------------
# small helpers


def _sublane(dtype) -> int:
    """Minimum second-to-last tile multiple for this dtype's sublane packing."""
    return {4: 8, 2: 16, 1: 32}.get(jnp.dtype(dtype).itemsize, 8)


def _int_pow(x, p: int):
    """x**p for integer p >= 1 via exponentiation-by-squaring (VALU only)."""
    result = None
    base = x
    while p > 0:
        if p & 1:
            result = base if result is None else result * base
        p >>= 1
        if p:
            base = base * base
    return result


def _pow_elem(xf, power: float):
    """Elementwise x**power in f32 (matches torch.Tensor.pow semantics)."""
    if power == 2.0:
        return xf * xf
    if float(power).is_integer() and power >= 1.0:
        return _int_pow(xf, int(power))
    # NOTE: fractional powers use exp/log on the single EUP slot and can flip
    # the kernel from HBM-bound to EUP-bound (worst on v5e).
    return jnp.power(xf, power)


def _inv_from_sum(s, power: float):
    """(row Lp sum)^(-1/power); operates only on the (tm, 1) reduction."""
    if power == 2.0:
        return lax.rsqrt(s)  # per-row, EUP slot
    return jnp.power(s, -1.0 / power)


def _tpu_budget():
    """Returns (per-core VMEM bytes, has_two_tensorcores) with safe fallbacks."""
    vmem_bytes = None
    try:
        vmem_bytes = int(pltpu.get_tpu_info().vmem_capacity_bytes)
    except Exception:
        pass
    kind = ""
    try:
        kind = jax.devices()[0].device_kind.lower()
    except Exception:
        pass
    is_v7 = ("v7" in kind) or ("7x" in kind)
    if vmem_bytes is None:
        vmem_bytes = 64 * 1024 * 1024 if is_v7 else 128 * 1024 * 1024
    two_cores = is_v7 or vmem_bytes <= 64 * 1024 * 1024
    return vmem_bytes, two_cores


def _choose_tm(n, d, dtype, two_cores, max_block_bytes):
    """Row-tile height: ~4 MiB lane-dense blocks, sublane-aligned, with a
    generation-aware grid length (even, >=6 steps on 2-TC parts; >=2 on 1-TC
    parts; never shrink below ~1 MiB blocks)."""
    sub = _sublane(dtype)
    itemsize = jnp.dtype(dtype).itemsize
    row_bytes = max(1, d * itemsize)

    target = min(4 * 1024 * 1024, max_block_bytes)
    tm = max(sub, (target // row_bytes) // sub * sub)
    tm = min(tm, pl.cdiv(n, sub) * sub)

    min_steps = 6 if two_cores else 2
    min_block = 1 * 1024 * 1024
    while pl.cdiv(n, tm) < min_steps:
        tm_half = max(sub, (tm // 2) // sub * sub)
        if tm_half == tm or tm_half * row_bytes < min_block:
            break
        tm = tm_half

    if two_cores:
        steps = pl.cdiv(n, tm)
        if steps > 1 and steps % 2 == 1:
            # even grid so both TensorCores get equal work (no straggler step)
            tm_even = max(sub, pl.cdiv(pl.cdiv(n, steps + 1), sub) * sub)
            if (pl.cdiv(n, tm_even) % 2 == 0
                    and tm_even * row_bytes >= min_block // 2):
                tm = tm_even
    return tm


# ---------------------------------------------------------------------------
# fast path: whole feature dim in one lane-dense block


def _normalize_kernel(x_ref, o_ref, *, power: float):
    # x_ref: (tm, D) tile in VMEM. Upcast once, scale in f32, cast once.
    xf = x_ref[...].astype(jnp.float32)
    s = jnp.sum(_pow_elem(xf, power), axis=1, keepdims=True)  # (tm, 1) f32
    o_ref[...] = (xf * _inv_from_sum(s, power)).astype(o_ref.dtype)


def _normalize_full_d(x, power, two_cores, pipeline_budget):
    N, D = x.shape
    itemsize = jnp.dtype(x.dtype).itemsize
    tm = _choose_tm(N, D, x.dtype, two_cores, pipeline_budget // 4)
    block_bytes = tm * D * itemsize
    vmem_limit = min(
        max(4 * block_bytes + 8 * 1024 * 1024, 32 * 1024 * 1024),
        pipeline_budget + 8 * 1024 * 1024,
        48 * 1024 * 1024,
    )
    # Ragged N: grid = cdiv(N, tm); the partial last block is masked by Pallas
    # (no wrapper pad / slice, so no extra HBM traffic).
    return pl.pallas_call(
        functools.partial(_normalize_kernel, power=power),
        out_shape=jax.ShapeDtypeStruct((N, D), x.dtype),
        grid=(pl.cdiv(N, tm),),
        in_specs=[pl.BlockSpec((tm, D), lambda i: (i, 0))],
        out_specs=pl.BlockSpec((tm, D), lambda i: (i, 0)),
        compiler_params=pltpu.CompilerParams(
            dimension_semantics=("parallel",),
            vmem_limit_bytes=vmem_limit,
        ),
    )(x)


# ---------------------------------------------------------------------------
# fallback path: D tiled (two passes) for feature dims too large for VMEM


def _lp_inv_kernel(x_ref, inv_ref, s_ref, *, power: float, d: int, td: int):
    j = pl.program_id(1)

    @pl.when(j == 0)
    def _():
        s_ref[...] = jnp.zeros_like(s_ref)

    xp = _pow_elem(x_ref[...].astype(jnp.float32), power)
    if d % td != 0:
        # Mask the ragged lane tail of the last D tile: those lanes hold
        # unspecified padding that must not enter the row sum.
        col = lax.broadcasted_iota(jnp.int32, xp.shape, 1)
        xp = jnp.where(col < (d - j * td), xp, 0.0)
    s_ref[...] += jnp.sum(xp, axis=1, keepdims=True)

    @pl.when(j == pl.num_programs(1) - 1)
    def _():
        inv_ref[...] = _inv_from_sum(s_ref[...], power)


def _scale_kernel(x_ref, inv_ref, o_ref):
    o_ref[...] = (x_ref[...].astype(jnp.float32) * inv_ref[...]).astype(o_ref.dtype)


def _normalize_split_d(x, power, d_block, pipeline_budget):
    N, D = x.shape
    dtype = x.dtype
    itemsize = jnp.dtype(dtype).itemsize
    sub = _sublane(dtype)

    if d_block is not None:
        td = max(128, (int(d_block) // 128) * 128)
    else:
        td = max(128, ((pipeline_budget // 4) // (sub * itemsize)) // 128 * 128)
    td = min(td, pl.cdiv(D, 128) * 128)  # lane-dense (multiple of 128)

    target = min(4 * 1024 * 1024, pipeline_budget // 4)
    tm = max(sub, (target // max(1, td * itemsize)) // sub * sub)
    tm = min(tm, pl.cdiv(N, sub) * sub)

    block_bytes = tm * td * itemsize
    vmem_limit = min(
        max(4 * block_bytes + 8 * 1024 * 1024, 32 * 1024 * 1024),
        48 * 1024 * 1024,
    )
    row_grid = pl.cdiv(N, tm)
    d_grid = pl.cdiv(D, td)

    # Pass 1: per-row Lp sum accumulated over D tiles -> 1/norm, shape (N, 1).
    inv = pl.pallas_call(
        functools.partial(_lp_inv_kernel, power=power, d=D, td=td),
        out_shape=jax.ShapeDtypeStruct((N, 1), jnp.float32),
        grid=(row_grid, d_grid),
        in_specs=[pl.BlockSpec((tm, td), lambda i, j: (i, j))],
        out_specs=pl.BlockSpec((tm, 1), lambda i, j: (i, 0)),
        scratch_shapes=[pltpu.VMEM((tm, 1), jnp.float32)],
        compiler_params=pltpu.CompilerParams(
            dimension_semantics=("parallel", "arbitrary"),
            vmem_limit_bytes=vmem_limit,
        ),
    )(x)

    # Pass 2: stream x again and scale by the per-row reciprocal norm.
    return pl.pallas_call(
        _scale_kernel,
        out_shape=jax.ShapeDtypeStruct((N, D), dtype),
        grid=(row_grid, d_grid),
        in_specs=[pl.BlockSpec((tm, td), lambda i, j: (i, j)),
                  pl.BlockSpec((tm, 1), lambda i, j: (i, 0))],
        out_specs=pl.BlockSpec((tm, td), lambda i, j: (i, j)),
        compiler_params=pltpu.CompilerParams(
            dimension_semantics=("parallel", "parallel"),
            vmem_limit_bytes=vmem_limit,
        ),
    )(x, inv)


# ---------------------------------------------------------------------------
# public wrapper


def normalize(x: jax.Array, power: float = 2, *, d_block: int | None = None) -> jax.Array:
    """Lp-normalize rows of a (N, D) array along axis 1 (PyTorch Normalize)."""
    assert x.ndim == 2, "kernel expects (N, D); flatten extra dims outside"
    # TODO(synk): >2-D inputs (dim=1 of an NCHW tensor) would need a transpose
    # so the reduced dim lands on the lane axis; not needed for MCL embeddings.
    N, D = x.shape
    power = float(power)
    sub = _sublane(x.dtype)
    row_bytes = D * jnp.dtype(x.dtype).itemsize

    vmem_bytes, two_cores = _tpu_budget()
    # 4x block = double-buffered input + output must fit the per-core budget.
    pipeline_budget = min(int(vmem_bytes * 0.55), 40 * 1024 * 1024)

    force_split = d_block is not None and d_block < D
    if not force_split and 4 * sub * row_bytes <= pipeline_budget:
        return _normalize_full_d(x, power, two_cores, pipeline_budget)
    return _normalize_split_d(x, power, d_block, pipeline_budget)


def normalize_ref(x: jax.Array, power: float = 2) -> jax.Array:
    """Pure-JAX reference matching the PyTorch module."""
    xf = x.astype(jnp.float32)
    norm = jnp.power(
        jnp.sum(jnp.power(xf, float(power)), axis=1, keepdims=True),
        1.0 / float(power),
    )
    return (xf / norm).astype(x.dtype)


if __name__ == "__main__":
    key = jax.random.PRNGKey(0)
    k1, k2 = jax.random.split(key)

    # Small embedding-bank style input; N deliberately not a multiple of the
    # sublane/row tile so the ragged (masked) last block is exercised.
    N, D = 37, 128
    x = jax.random.normal(k1, (N, D), dtype=jnp.float32)

    # power = 2 (default): rsqrt + broadcast multiply
    out = jax.block_until_ready(normalize(x, power=2))
    ref = normalize_ref(x, power=2)
    assert out.shape == (N, D) and out.dtype == x.dtype
    assert jnp.allclose(out, ref, atol=1e-5, rtol=1e-5), "p=2 mismatch vs reference"
    assert jnp.allclose(jnp.linalg.norm(out, axis=1), 1.0, atol=1e-4)

    # even integer power: exponentiation-by-squaring + per-row root
    out4 = jax.block_until_ready(normalize(x, power=4))
    assert jnp.allclose(out4, normalize_ref(x, power=4), atol=1e-5, rtol=1e-5), "p=4 mismatch"

    # odd / fractional powers (positive input so the root is real, as in torch)
    x_pos = jnp.abs(x) + 0.1
    out3 = jax.block_until_ready(normalize(x_pos, power=3))
    assert jnp.allclose(out3, normalize_ref(x_pos, power=3), atol=1e-5, rtol=1e-5), "p=3 mismatch"
    out25 = jax.block_until_ready(normalize(x_pos, power=2.5))
    assert jnp.allclose(out25, normalize_ref(x_pos, power=2.5), atol=1e-4, rtol=1e-4), "p=2.5 mismatch"

    # bf16 input: kernel scales in f32 and casts once, matching the reference
    xb = x.astype(jnp.bfloat16)
    outb = jax.block_until_ready(normalize(xb, power=2))
    refb = normalize_ref(xb, power=2)
    assert outb.dtype == jnp.bfloat16
    assert jnp.allclose(outb.astype(jnp.float32), refb.astype(jnp.float32),
                        atol=1e-2, rtol=1e-2), "bf16 mismatch"

    # D-split two-pass fallback (forced small d tile; D not a multiple of the
    # tile so the in-kernel lane-tail mask is exercised too)
    N2, D2 = 24, 400
    y = jax.random.normal(k2, (N2, D2), dtype=jnp.float32)
    outs = jax.block_until_ready(normalize(y, power=2, d_block=128))
    assert jnp.allclose(outs, normalize_ref(y, power=2), atol=1e-5, rtol=1e-5), "split-D mismatch"

    # TODO(synk): no epsilon / zero-norm clamp, matching the PyTorch module
    # (an all-zero row yields inf/NaN in both implementations).

    print("KERNEL_OK")
</pallas_src>

<mosaic_0001>
module attributes {stable_mosaic.version = 11 : i64} {
  func.func @_normalize_kernel(%arg0: i32, %arg1: memref<40x128xf32, #tpu.memory_space<vmem>>, %arg2: memref<40x128xf32, #tpu.memory_space<vmem>>) attributes {dimension_semantics = [#tpu.dimension_semantics<parallel>], iteration_bounds = array<i64: 1>, scalar_prefetch = 0 : i64, scratch_operands = 0 : i64, tpu.core_type = #tpu.core_type<tc>, window_params = [{transform_indices = @transform_0, window_bounds = array<i64: 40, 128>}, {transform_indices = @transform_1, window_bounds = array<i64: 40, 128>}]} {
    %c0 = arith.constant 0 : index
    %c0_0 = arith.constant 0 : index
    %0 = vector.load %arg1[%c0, %c0_0] : memref<40x128xf32, #tpu.memory_space<vmem>>, vector<40x128xf32>
    %1 = arith.mulf %0, %0 : vector<40x128xf32>
    %cst = arith.constant dense<0.000000e+00> : vector<40xf32>
    %2 = vector.multi_reduction <add>, %1, %cst [1] : vector<40x128xf32> to vector<40xf32>
    %3 = vector.shape_cast %2 : vector<40xf32> to vector<40x1xf32>
    %4 = math.rsqrt %3 : vector<40x1xf32>
    %5 = vector.broadcast %4 : vector<40x1xf32> to vector<40x128xf32>
    %6 = arith.mulf %0, %5 : vector<40x128xf32>
    %c0_1 = arith.constant 0 : index
    %c0_2 = arith.constant 0 : index
    %7 = vector.load %arg2[%c0_1, %c0_2] : memref<40x128xf32, #tpu.memory_space<vmem>>, vector<40x128xf32>
    tpu.vector_store %arg2[%c0_1, %c0_2], %6 {strides = array<i32>} : memref<40x128xf32, #tpu.memory_space<vmem>>, vector<40x128xf32>,
    return
  }
  func.func @transform_0(%arg0: i32) -> (i32, i32) {
    %c0_i32 = arith.constant 0 : i32
    %c0_i32_0 = arith.constant 0 : i32
    return %arg0, %c0_i32 : i32, i32
  }
  func.func @transform_1(%arg0: i32) -> (i32, i32) {
    %c0_i32 = arith.constant 0 : i32
    %c0_i32_0 = arith.constant 0 : i32
    return %arg0, %c0_i32 : i32, i32
  }
}

</mosaic_0001>

<bundles_post_ra>
// kernel: tpu_custom_call.1
= control target key start
LH: loop header
LB: loop body
LE: loop exit
PB: predicated region body
PF: predicated region fallthrough
CT: control target
= control target key end

     0   :  { %6 = vsyncpa [#allocation3], 0  ;;  %s181_s0 = inlined_call_operand.hbm [shape: f32[37,128], index: 0, kind: input, shape index: {}]   ;;  %s182_s1 = inlined_call_operand.hbm [shape: f32[37,128], index: 1, kind: output, shape index: {}]  }
   0x1   :  { %7 = vsyncpa [#allocation4], 0  ;;  %s137_s6 = smov [#allocation2]   ;;  %s89_s10 = scalar_lea.hbm %s181_s0, 640 }
   0x2   :  { %s13_s7 = sshll.u32 %s137_s6, 4  ;;  %p90_p0 = scmp.ne.s32.totalorder %s181_s0, %s89_s10  ;;  %s14_s7 = int_to_ptr.vmem [resolvable:$true] %s13_s7 }
   0x3   :  { %p93_p1 = scmp.lt.u32.totalorder %s89_s10, %s181_s0 }
   0x5   :  { %p95_p2 = pnand %p93_p1, %p90_p0 }
   0x7   :  { %98 = shalt.err (!%p95_p2)
}
   0x8   :  { %s99_s15 = scalar_lea.vmem %s14_s7, 640  ;;  %p104_p4 = scmp.lt.s32.totalorder %s14_s7, %s14_s7 }
   0x9   :  { %p100_p3 = scmp.ne.s32.totalorder %s14_s7, %s99_s15  ;;  %p105_p5 = scmp.lt.s32.totalorder %s99_s15, %s99_s15 }
   0xb   :  { %p106_p6 = por %p105_p5, %p104_p4 }
   0xd   :  { %p107_p7 = pnand %p106_p6, %p100_p3 }
   0xf   :  { %110 = shalt.err (!%p107_p7)
}
  0x10   :  { %s138_s16 = smov 128   ;;  %s139_s17 = smov 8  }
  0x11   :  { %19 = dma.hbm_to_vmem [thread:$0]  %s181_s0, 640, %s14_s7, [#allocation3], %s138_s16, %s138_s16, %s139_s17  }
  0x12   :  { %133 = dma.done.wait [#allocation3], 640  }
  0x13   :  { %134 = vsyncadd [#allocation3], 4294966656  ;;  %v23_v0 = vld [vmem:[#allocation2] sm:$0xff]  ;;  %v25_v1 = vld [vmem:[#allocation2 + $0x10] sm:$0xff]  ;;  %s140_s0 = smov [#allocation5]  }
  0x14   :  { %v24_v2 = vld [vmem:[#allocation2 + $0x8] sm:$0xff]  ;;  %v28_v3 = vmul.f32 %v23_v0, %v23_v0  ;;  %v30_v4 = vmul.f32 %v25_v1, %v25_v1  ;;  %v26_v5 = vld [vmem:[#allocation2 + $0x18] sm:$0xff]  ;;  %v27_v8 = vld [vmem:[#allocation2 + $0x20] sm:$0xff]  ;;  %s63_s20 = sshll.u32 %s140_s0, 4  ;;  %s64_s20 = int_to_ptr.vmem [resolvable:$true] %s63_s20 }
  0x15   :  { %v29_v6 = vmul.f32 %v24_v2, %v24_v2  ;;  %v31_v7 = vmul.f32 %v26_v5, %v26_v5  ;;  %v32_v9 = vmul.f32 %v27_v8, %v27_v8  ;;  %s111_s21 = scalar_lea.vmem %s64_s20, 640  ;;  %p116_p9 = scmp.lt.s32.totalorder %s64_s20, %s64_s20 }
  0x16   :  { %33 = vadd.xlane.f32.xlu0 %v28_v3  ;;  %37 = vadd.xlane.f32.xlu1 %v30_v4  ;;  %p112_p8 = scmp.ne.s32.totalorder %s64_s20, %s111_s21  ;;  %p117_p10 = scmp.lt.s32.totalorder %s111_s21, %s111_s21 }
  0x18   :  { %p118_p11 = por %p117_p10, %p116_p9 }
  0x1a   :  { %35 = vadd.xlane.f32.xlu0 %v29_v6  ;;  %39 = vadd.xlane.f32.xlu1 %v31_v7  ;;  %p119_p12 = pnand %p118_p11, %p112_p8 }
  0x1e   :  { %41 = vadd.xlane.f32.xlu0 %v32_v9 }
  0xa3   :  { %v34_v10 = vpop.xlane.xlu0 %33  ;;  %v38_v11 = vpop.xlane.xlu1 %37 }
  0xa4   :  { %79 = vrsqrt.f32 %v34_v10 }
  0xa5   :  { %81 = vrsqrt.f32 %v38_v11 }
  0xa7   :  { %v36_v12 = vpop.xlane.xlu0 %35  ;;  %v40_v13 = vpop.xlane.xlu1 %39 }
  0xa8   :  { %83 = vrsqrt.f32 %v36_v12 }
  0xa9   :  { %85 = vrsqrt.f32 %v40_v13 }
  0xab   :  { %v42_v14 = vpop.xlane.xlu0 %41 }
  0xac   :  { %87 = vrsqrt.f32 %v42_v14 }
  0xae   :  { %v80_v15 = vpop.eup %79 }
  0xaf   :  { %v82_v16 = vpop.eup %81  ;;  %v48_v17 = vmul.f32 %v80_v15, %v23_v0 }
  0xb0   :  { %v50_v18 = vmul.f32 %v82_v16, %v25_v1 }
  0xb1   :  { %53 = vst [vmem:[#allocation5] sm:$0xff] %v48_v17 }
  0xb2   :  { %v84_v19 = vpop.eup %83  ;;  %55 = vst [vmem:[#allocation5 + $0x10] sm:$0xff] %v50_v18 }
  0xb3   :  { %v86_v20 = vpop.eup %85  ;;  %v49_v21 = vmul.f32 %v84_v19, %v24_v2 }
  0xb4   :  { %v51_v22 = vmul.f32 %v86_v20, %v26_v5 }
  0xb5   :  { %54 = vst [vmem:[#allocation5 + $0x8] sm:$0xff] %v49_v21 }
  0xb6   :  { %v88_v23 = vpop.eup %87  ;;  %56 = vst [vmem:[#allocation5 + $0x18] sm:$0xff] %v51_v22 }
  0xb7   :  { %v52_v24 = vmul.f32 %v88_v23, %v27_v8 }
  0xb9   :  { %57 = vst [vmem:[#allocation5 + $0x20] sm:$0xff] %v52_v24 }
  0xba   :  { %122 = shalt.err (!%p119_p12)
}
  0xbb   :  { %s123_s24 = scalar_lea.hbm %s182_s1, 640 }
  0xbc   :  { %p124_p13 = scmp.ne.s32.totalorder %s182_s1, %s123_s24  ;;  %p127_p0 = scmp.lt.u32.totalorder %s123_s24, %s182_s1 }
  0xbe   :  { %p129_p1 = pnand %p127_p0, %p124_p13 }
  0xc0   :  { %132 = shalt.err (!%p129_p1)
}
  0xc1   :  { %69 = dma.vmem_to_hbm [thread:$0]  %s64_s20, 640, %s182_s1, [#allocation4], %s138_s16, %s138_s16, %s139_s17  }
  0xc2   :  { %135 = dma.done.wait [#allocation4], 640  }
  0xc3   :  { %136 = vsyncadd [#allocation4], 4294966656 }
  0xc4   :  { %73 = vsyncpa [#allocation3], 1 }
  0xc5   :  { %74 = vsyncpa [#allocation4], 1 }

</bundles_post_ra>
